<compile_context>
chip_gen: v7x
topology: tpu7x:2x2x1
jax: 0.10.0
libtpu: 0.0.40
codegen_flags: <defaults>
</compile_context>

<pallas_src>
import functools

import numpy as np
import jax
import jax.numpy as jnp
from jax.experimental import pallas as pl
from jax.experimental.pallas import tpu as pltpu

_LANE = 128
_SUBLANE = 8
_PALLAS_MIN_ROWS = 512  # below this a pallas_call is pure launch overhead


# ------------------------------ small helpers -------------------------------

def _round_up(x, m):
    return ((x + m - 1) // m) * m


def _nbytes(shape, dtype):
    return int(np.prod(shape)) * jnp.dtype(dtype).itemsize


def _detect_const_pipeline_mode():
    """pipeline_mode=pl.Buffered(1) single-buffers operands whose index_map is
    constant across the grid (weights/bias). Feature-detect so the script still
    runs on jax versions without the kwarg."""
    if not hasattr(pl, "Buffered"):
        return False
    try:
        pl.BlockSpec((8, 128), lambda i: (0, 0), pipeline_mode=pl.Buffered(1))
        return True
    except Exception:
        return False


_SINGLE_BUFFER_CONSTS = _detect_const_pipeline_mode()


def _const_spec(shape):
    """BlockSpec for an operand that is identical at every grid step."""
    index_map = lambda i: tuple(0 for _ in shape)
    if _SINGLE_BUFFER_CONSTS:
        return pl.BlockSpec(shape, index_map, pipeline_mode=pl.Buffered(1))
    return pl.BlockSpec(shape, index_map)


def _row_spec(shape):
    """BlockSpec for an (M, C)-style operand tiled along rows."""
    return pl.BlockSpec(shape, lambda i: (i, 0))


def _choose_tm(m, tm_max):
    """Pick a row tile: prefer sizes that divide M exactly (no pad / slice
    copies), give >= 4 grid steps (DMA pipeline actually overlaps; both v7x
    TensorCores get >= 2 steps), and are MXU/bf16 friendly (multiples of 256,
    then 128/64/32/16)."""
    cands = [c for c in (1024, 768, 512, 256, 128, 64, 32, 16) if c <= tm_max]
    for min_steps in (4, 2, 1):
        for c in cands:
            if m % c == 0 and m // c >= min_steps:
                return c
    for c in cands:  # no exact divisor: pad M up to the tile
        if c <= _round_up(m, _SUBLANE):
            return c
    return _round_up(m, 16)


def _vmem_limit(stream_bytes, const_bytes=()):
    """Streaming operands are double-buffered by the pipeline, constant operands
    single-buffered (when Buffered(1) is available). Floor 32 MiB (v5e scoped
    default is only 16 MiB); cap 48 MiB so we never claim v7x's entire 64 MiB
    physical VMEM (headroom for Mosaic internal scratch)."""
    const_mult = 1 if _SINGLE_BUFFER_CONSTS else 2
    need = 2 * int(sum(stream_bytes)) + const_mult * int(sum(const_bytes)) + (8 << 20)
    return int(min(max(need, 32 << 20), 48 << 20))


# ----------------------------- Pallas kernels -------------------------------

def _mlp_kernel(x_ref, w_ref, b_ref, o_ref):
    # (tm, Cin) bf16 @ (Cin, Epad) bf16 (f32 accumulate) + (1, Epad) f32 bias
    y = jnp.dot(x_ref[...], w_ref[...], preferred_element_type=jnp.float32)
    y = y + b_ref[...]
    o_ref[...] = y.astype(o_ref.dtype)


def mlp_proj(x2d, w, b, tm_max=1024):
    """Linear projection over the channel dim: (M, Cin) bf16 -> (M, Epad) bf16."""
    M, Cin = x2d.shape
    Epad = w.shape[1]
    tm = _choose_tm(M, tm_max)
    Mpad = _round_up(M, tm)
    if Mpad != M:
        x2d = jnp.pad(x2d, ((0, Mpad - M), (0, 0)))

    vmem = _vmem_limit(
        stream_bytes=[_nbytes((tm, Cin), x2d.dtype),
                      _nbytes((tm, Epad), jnp.bfloat16)],
        const_bytes=[_nbytes((Cin, Epad), w.dtype),
                     _nbytes((1, Epad), b.dtype)],
    )

    out = pl.pallas_call(
        _mlp_kernel,
        out_shape=jax.ShapeDtypeStruct((Mpad, Epad), jnp.bfloat16),
        grid_spec=pltpu.PrefetchScalarGridSpec(
            num_scalar_prefetch=0,
            grid=(Mpad // tm,),
            in_specs=[
                _row_spec((tm, Cin)),
                _const_spec((Cin, Epad)),
                _const_spec((1, Epad)),
            ],
            out_specs=_row_spec((tm, Epad)),
        ),
        compiler_params=pltpu.CompilerParams(
            dimension_semantics=("parallel",),
            vmem_limit_bytes=vmem,
        ),
    )(x2d, w, b)
    return out[:M] if Mpad != M else out


def _fuse_pred_kernel(c4_ref, c3_ref, c2_ref, c1_ref,
                      wf_ref, wf1_ref, scale_ref, shift_ref,
                      wp_ref, bp_ref, o_ref, *, E):
    # concat([c4,c3,c2,c1_proj], axis=C) @ W_fuse  ==  sum of per-level matmuls.
    y = jnp.dot(c4_ref[...], wf_ref[0 * E:1 * E, :], preferred_element_type=jnp.float32)
    y = y + jnp.dot(c3_ref[...], wf_ref[1 * E:2 * E, :], preferred_element_type=jnp.float32)
    y = y + jnp.dot(c2_ref[...], wf_ref[2 * E:3 * E, :], preferred_element_type=jnp.float32)
    # c1's Linear projection is folded algebraically into wf1 (its bias into
    # shift), so the raw full-resolution c1 feature feeds the MXU directly.
    y = y + jnp.dot(c1_ref[...], wf1_ref[...], preferred_element_type=jnp.float32)
    # BatchNorm (eval, folded into scale/shift) + ReLU, in f32.
    y = jnp.maximum(y * scale_ref[...] + shift_ref[...], 0.0)
    # Dropout2d is identity at inference time.
    # linear_pred: 1x1 conv with bias, lane-padded class dim (dense stores).
    z = jnp.dot(y.astype(wp_ref.dtype), wp_ref[...], preferred_element_type=jnp.float32)
    o_ref[...] = (z + bp_ref[...]).astype(o_ref.dtype)


def fuse_and_predict(c4f, c3f, c2f, c1raw, wf_top, wf1, scale, shift, wp, bp,
                     tm_max=512):
    """c4f/c3f/c2f: (M, Epad) bf16, c1raw: (M, C1) bf16. Returns (M, NCpad) bf16."""
    M, Epad = c4f.shape
    C1 = c1raw.shape[1]
    NCpad = wp.shape[1]
    tm = _choose_tm(M, tm_max)
    Mpad = _round_up(M, tm)
    if Mpad != M:
        pad = ((0, Mpad - M), (0, 0))
        c4f, c3f, c2f, c1raw = (jnp.pad(a, pad) for a in (c4f, c3f, c2f, c1raw))

    vmem = _vmem_limit(
        stream_bytes=[3 * _nbytes((tm, Epad), jnp.bfloat16),
                      _nbytes((tm, C1), jnp.bfloat16),
                      _nbytes((tm, NCpad), jnp.bfloat16)],
        const_bytes=[_nbytes((3 * Epad, Epad), jnp.bfloat16),
                     _nbytes((C1, Epad), jnp.bfloat16),
                     2 * _nbytes((1, Epad), jnp.float32),
                     _nbytes((Epad, NCpad), jnp.bfloat16),
                     _nbytes((1, NCpad), jnp.float32)],
    )

    kernel = functools.partial(_fuse_pred_kernel, E=Epad)

    out = pl.pallas_call(
        kernel,
        out_shape=jax.ShapeDtypeStruct((Mpad, NCpad), jnp.bfloat16),
        grid_spec=pltpu.PrefetchScalarGridSpec(
            num_scalar_prefetch=0,
            grid=(Mpad // tm,),
            in_specs=[
                _row_spec((tm, Epad)),          # c4 (projected, resized)
                _row_spec((tm, Epad)),          # c3
                _row_spec((tm, Epad)),          # c2
                _row_spec((tm, C1)),            # c1 raw channels
                _const_spec((3 * Epad, Epad)),  # W_fuse for c4/c3/c2 (block-padded)
                _const_spec((C1, Epad)),        # W_c1 @ W_fuse[c1 block]
                _const_spec((1, Epad)),         # bn scale (f32)
                _const_spec((1, Epad)),         # bn shift (+ folded c1 bias) (f32)
                _const_spec((Epad, NCpad)),     # W_pred
                _const_spec((1, NCpad)),        # b_pred (f32)
            ],
            out_specs=_row_spec((tm, NCpad)),
        ),
        compiler_params=pltpu.CompilerParams(
            dimension_semantics=("parallel",),
            vmem_limit_bytes=vmem,
        ),
    )(c4f, c3f, c2f, c1raw, wf_top, wf1, scale, shift, wp, bp)
    return out[:M] if Mpad != M else out


# ------------------------------- JAX glue ------------------------------------

def _bilinear_matrix(out_size, in_size):
    """(out, in) interpolation matrix matching torch bilinear, align_corners=False."""
    if out_size == in_size:
        return jnp.eye(out_size, dtype=jnp.float32)
    scale = in_size / out_size
    dst = jnp.arange(out_size, dtype=jnp.float32)
    src = jnp.maximum((dst + 0.5) * scale - 0.5, 0.0)
    i0 = jnp.minimum(jnp.floor(src).astype(jnp.int32), in_size - 1)
    i1 = jnp.minimum(i0 + 1, in_size - 1)
    f = src - i0.astype(jnp.float32)
    oh0 = jax.nn.one_hot(i0, in_size, dtype=jnp.float32)
    oh1 = jax.nn.one_hot(i1, in_size, dtype=jnp.float32)
    return oh0 * (1.0 - f)[:, None] + oh1 * f[:, None]


def bilinear_resize_nhwc(x, out_h, out_w):
    """Separable bilinear resize via two small dense matmuls (MXU-friendly, no
    gather/scatter). Runs in the input dtype, so bf16 features stay bf16
    end-to-end (no full-resolution f32 intermediate + separate cast copy)."""
    _, h, w, _ = x.shape
    mh = _bilinear_matrix(out_h, h).astype(x.dtype)
    mw = _bilinear_matrix(out_w, w).astype(x.dtype)
    y = jnp.einsum('Hh,nhwc->nHwc', mh, x)
    y = jnp.einsum('Ww,nHwc->nHWc', mw, y)
    return y


def segformer_head_forward(inputs_nchw, prep):
    """inputs_nchw: [c1, c2, c3, c4] each (N, Ci, Hi, Wi). Returns (N, num_classes, H1, W1) f32."""
    c1, c2, c3, c4 = inputs_nchw
    n, _, H1, W1 = c1.shape
    Epad = prep["e_pad"]
    nc = prep["num_classes"]

    def nhwc_rows(x, cin_pad):
        n_, ci, hi, wi = x.shape
        rows = jnp.transpose(x, (0, 2, 3, 1)).reshape(n_ * hi * wi, ci)
        if cin_pad != ci:
            # lane-pad the contraction dim; fuses into the transpose copy
            rows = jnp.pad(rows, ((0, 0), (0, cin_pad - ci)))
        return rows.astype(jnp.bfloat16), hi, wi

    projected = []
    for feat, name in ((c4, "c4"), (c3, "c3"), (c2, "c2")):
        x2d, hi, wi = nhwc_rows(feat, prep["cin_" + name])
        w, b = prep["w_" + name], prep["b_" + name]
        if x2d.shape[0] >= _PALLAS_MIN_ROWS:
            y = mlp_proj(x2d, w, b)
        else:
            # tiny pyramid level: a 1-2 step pallas_call is pure launch overhead
            # and XLA fuses the dot with the following resize/cast
            y = (jnp.dot(x2d, w, preferred_element_type=jnp.float32) + b).astype(jnp.bfloat16)
        y = y.reshape(n, hi, wi, Epad)
        if (hi, wi) != (H1, W1):
            y = bilinear_resize_nhwc(y, H1, W1)   # stays bf16
        projected.append(y.reshape(n * H1 * W1, Epad))

    c4f, c3f, c2f = projected
    c1_rows, _, _ = nhwc_rows(c1, prep["cin_c1"])

    out2d = fuse_and_predict(c4f, c3f, c2f, c1_rows,
                             prep["wf_top"], prep["wf1_fold"],
                             prep["bn_scale"], prep["bn_shift"],
                             prep["w_pred"], prep["b_pred"])
    out = out2d[:, :nc].reshape(n, H1, W1, nc)
    # back to NCHW; f32 logits (cast fuses with the transpose copy)
    return jnp.transpose(out, (0, 3, 1, 2)).astype(jnp.float32)


# ------------------------------ parameters -----------------------------------

def make_params(key, in_channels, embed_dim, num_classes):
    """Raw (PyTorch-equivalent, f32, unpadded) parameters."""
    keys = jax.random.split(key, 16)
    p = {}
    names = ["c1", "c2", "c3", "c4"]
    for i, (name, cin) in enumerate(zip(names, in_channels)):
        p["w_" + name] = 0.05 * jax.random.normal(keys[i], (cin, embed_dim), jnp.float32)
        p["b_" + name] = 0.01 * jax.random.normal(keys[4 + i], (1, embed_dim), jnp.float32)
    # linear_fuse: 1x1 conv, bias=False (BN follows). Weight laid out as (4*E, E)
    # with input-channel order [c4, c3, c2, c1] to mirror torch.cat order.
    p["w_fuse"] = 0.05 * jax.random.normal(keys[8], (4 * embed_dim, embed_dim), jnp.float32)
    # BatchNorm2d (eval): fold gamma/beta/mean/var into scale & shift
    gamma = 1.0 + 0.1 * jax.random.normal(keys[9], (embed_dim,), jnp.float32)
    beta = 0.1 * jax.random.normal(keys[10], (embed_dim,), jnp.float32)
    r_mean = 0.1 * jax.random.normal(keys[11], (embed_dim,), jnp.float32)
    r_var = jnp.abs(1.0 + 0.1 * jax.random.normal(keys[12], (embed_dim,), jnp.float32))
    eps = 1e-5
    scale = gamma / jnp.sqrt(r_var + eps)
    p["bn_scale"] = scale.reshape(1, embed_dim)
    p["bn_shift"] = (beta - r_mean * scale).reshape(1, embed_dim)
    # linear_pred: 1x1 conv with bias
    p["w_pred"] = 0.05 * jax.random.normal(keys[13], (embed_dim, num_classes), jnp.float32)
    p["b_pred"] = 0.01 * jax.random.normal(keys[14], (1, num_classes), jnp.float32)
    return p


def prepare_params(raw, in_channels, embed_dim, num_classes):
    """Fold / pad / cast the raw parameters for the TPU kernels (done once, offline)."""
    E = embed_dim
    Epad = _round_up(E, _LANE)
    NCpad = _round_up(num_classes, _LANE)
    prep = {"embed_dim": E, "e_pad": Epad, "num_classes": num_classes, "nc_pad": NCpad}

    def cin_pad(c):
        # lane-pad the contraction dim only when large & ragged (e.g. 320 -> 384)
        return _round_up(c, _LANE) if c > _LANE else c

    def pad2(a, rows, cols):
        return jnp.pad(a, ((0, rows - a.shape[0]), (0, cols - a.shape[1])))

    for name, cin in zip(("c1", "c2", "c3", "c4"), in_channels):
        prep["cin_" + name] = cin_pad(cin)

    # Per-level projections for c2..c4 (c1 is folded into the fuse weights below).
    for name in ("c2", "c3", "c4"):
        w = raw["w_" + name]
        b = raw["b_" + name]
        prep["w_" + name] = pad2(w, prep["cin_" + name], Epad).astype(jnp.bfloat16)
        prep["b_" + name] = pad2(b, 1, Epad)  # f32 bias, added post-accumulation

    wf = raw["w_fuse"]  # (4E, E), input order [c4, c3, c2, c1]
    # Block-padded fuse weights for the 3 projected levels so the kernel slices
    # wf_top[l*Epad:(l+1)*Epad].
    wf_top = jnp.zeros((3 * Epad, Epad), jnp.float32)
    for l in range(3):
        wf_top = wf_top.at[l * Epad:l * Epad + E, :E].set(wf[l * E:(l + 1) * E])
    prep["wf_top"] = wf_top.astype(jnp.bfloat16)

    # Fold c1's Linear into the fuse conv: (x@Wc1 + bc1)@Wf1 = x@(Wc1@Wf1) + bc1@Wf1
    wf_c1 = wf[3 * E:4 * E]                       # (E, E)
    wf1_fold = raw["w_c1"] @ wf_c1                # (C1, E)
    bias_fold = raw["b_c1"] @ wf_c1               # (1, E), pre-BN additive term
    prep["wf1_fold"] = pad2(wf1_fold, prep["cin_c1"], Epad).astype(jnp.bfloat16)

    scale = raw["bn_scale"]
    shift = raw["bn_shift"] + bias_fold * scale
    prep["bn_scale"] = pad2(scale, 1, Epad)
    prep["bn_shift"] = pad2(shift, 1, Epad)

    prep["w_pred"] = pad2(raw["w_pred"], Epad, NCpad).astype(jnp.bfloat16)
    prep["b_pred"] = pad2(raw["b_pred"], 1, NCpad)
    return prep


# --------------------------- pure-JAX f32 reference ---------------------------

def segformer_head_reference(inputs_nchw, raw, embed_dim, num_classes):
    c1, c2, c3, c4 = inputs_nchw
    n, _, H1, W1 = c1.shape

    def proj(x, w, b):
        n_, ci, hi, wi = x.shape
        y = jnp.transpose(x, (0, 2, 3, 1)).reshape(n_ * hi * wi, ci) @ w + b
        return y.reshape(n_, hi, wi, embed_dim), hi, wi

    feats = []
    for x, name in ((c4, "c4"), (c3, "c3"), (c2, "c2"), (c1, "c1")):
        y, hi, wi = proj(x, raw["w_" + name], raw["b_" + name])
        if (hi, wi) != (H1, W1):
            y = bilinear_resize_nhwc(y, H1, W1)
        feats.append(y)
    cat = jnp.concatenate(feats, axis=-1)               # [c4, c3, c2, c1]
    y = cat.reshape(-1, 4 * embed_dim) @ raw["w_fuse"]
    y = jnp.maximum(y * raw["bn_scale"] + raw["bn_shift"], 0.0)
    z = y @ raw["w_pred"] + raw["b_pred"]
    return jnp.transpose(z.reshape(n, H1, W1, num_classes), (0, 3, 1, 2))


# ----------------------------------- main -------------------------------------

if __name__ == "__main__":
    key = jax.random.PRNGKey(0)
    batch = 2
    embed_dim = 32
    num_classes = 8
    in_channels = [8, 16, 32, 64]        # c1..c4 channels
    spatials = [32, 16, 8, 4]            # c1..c4 spatial (feature_strides = [4,8,16,32])

    k_in, k_p = jax.random.split(key)
    in_keys = jax.random.split(k_in, 4)
    inputs = [
        jax.random.normal(in_keys[i], (batch, in_channels[i], spatials[i], spatials[i]),
                          jnp.float32)
        for i in range(4)
    ]
    raw_params = make_params(k_p, in_channels, embed_dim, num_classes)
    prep_params = prepare_params(raw_params, in_channels, embed_dim, num_classes)

    out = jax.block_until_ready(segformer_head_forward(inputs, prep_params))

    assert out.shape == (batch, num_classes, spatials[0], spatials[0])
    assert bool(jnp.all(jnp.isfinite(out)))

    # Numerical check vs. pure-f32 reference (bf16 MXU / bf16 stores -> loose tolerance).
    ref = jax.block_until_ready(
        segformer_head_reference(inputs, raw_params, embed_dim, num_classes))
    max_diff = float(jnp.max(jnp.abs(out.astype(jnp.float32) - ref)))
    assert max_diff < 3e-2, f"max |diff| = {max_diff}"

    print("KERNEL_OK")
</pallas_src>

<mosaic_0001>
module attributes {stable_mosaic.version = 11 : i64} {
  func.func @_mlp_kernel(%arg0: i32, %arg1: memref<128x16xbf16, #tpu.memory_space<vmem>>, %arg2: memref<16x128xbf16, #tpu.memory_space<vmem>>, %arg3: memref<1x128xf32, #tpu.memory_space<vmem>>, %arg4: memref<128x128xbf16, #tpu.memory_space<vmem>>) attributes {dimension_semantics = [#tpu.dimension_semantics<parallel>], iteration_bounds = array<i64: 4>, scalar_prefetch = 0 : i64, scratch_operands = 0 : i64, tpu.core_type = #tpu.core_type<tc>, window_params = [{transform_indices = @transform_0, window_bounds = array<i64: 128, 16>}, {pipeline_mode = #tpu.pipeline_mode<synchronous>, transform_indices = @transform_1, window_bounds = array<i64: 16, 128>}, {pipeline_mode = #tpu.pipeline_mode<synchronous>, transform_indices = @transform_2, window_bounds = array<i64: 1, 128>}, {transform_indices = @transform_3, window_bounds = array<i64: 128, 128>}]} {
    %c0 = arith.constant 0 : index
    %c0_0 = arith.constant 0 : index
    %0 = vector.load %arg1[%c0, %c0_0] : memref<128x16xbf16, #tpu.memory_space<vmem>>, vector<128x16xbf16>
    %c0_1 = arith.constant 0 : index
    %c0_2 = arith.constant 0 : index
    %1 = vector.load %arg2[%c0_1, %c0_2] : memref<16x128xbf16, #tpu.memory_space<vmem>>, vector<16x128xbf16>
    %cst = arith.constant dense<0.000000e+00> : vector<128x128xf32>
    %2 = tpu.matmul %0, %1, %cst {dimension_numbers = #tpu.dot_dimension_numbers<[1], [0], [0], [1], [0, 0, 1, 1], [], []>} : vector<128x16xbf16>, vector<16x128xbf16>, vector<128x128xf32> -> vector<128x128xf32>
    %c0_3 = arith.constant 0 : index
    %c0_4 = arith.constant 0 : index
    %3 = vector.load %arg3[%c0_3, %c0_4] : memref<1x128xf32, #tpu.memory_space<vmem>>, vector<1x128xf32>
    %4 = vector.broadcast %3 : vector<1x128xf32> to vector<128x128xf32>
    %5 = arith.addf %2, %4 : vector<128x128xf32>
    %6 = arith.truncf %5 : vector<128x128xf32> to vector<128x128xbf16>
    %c0_5 = arith.constant 0 : index
    %c0_6 = arith.constant 0 : index
    %7 = vector.load %arg4[%c0_5, %c0_6] : memref<128x128xbf16, #tpu.memory_space<vmem>>, vector<128x128xbf16>
    tpu.vector_store %arg4[%c0_5, %c0_6], %6 {strides = array<i32>} : memref<128x128xbf16, #tpu.memory_space<vmem>>, vector<128x128xbf16>,
    return
  }
  func.func @transform_0(%arg0: i32) -> (i32, i32) {
    %c0_i32 = arith.constant 0 : i32
    %c0_i32_0 = arith.constant 0 : i32
    return %arg0, %c0_i32 : i32, i32
  }
  func.func @transform_1(%arg0: i32) -> (i32, i32) {
    %c0_i32 = arith.constant 0 : i32
    %c0_i32_0 = arith.constant 0 : i32
    %c0_i32_1 = arith.constant 0 : i32
    return %c0_i32, %c0_i32_0 : i32, i32
  }
  func.func @transform_2(%arg0: i32) -> (i32, i32) {
    %c0_i32 = arith.constant 0 : i32
    %c0_i32_0 = arith.constant 0 : i32
    %c0_i32_1 = arith.constant 0 : i32
    return %c0_i32, %c0_i32_0 : i32, i32
  }
  func.func @transform_3(%arg0: i32) -> (i32, i32) {
    %c0_i32 = arith.constant 0 : i32
    %c0_i32_0 = arith.constant 0 : i32
    return %arg0, %c0_i32 : i32, i32
  }
}

</mosaic_0001>

<bundles_post_ra>
// kernel: tpu_custom_call.1
= control target key start
LH: loop header
LB: loop body
LE: loop exit
PB: predicated region body
PF: predicated region fallthrough
CT: control target
= control target key end

     0   :  { %8 = vsyncpa [#allocation3], 0  ;;  %s929_s0 = inlined_call_operand.vmem [shape: bf16[512,16], index: 0, kind: input, shape index: {}]   ;;  %s930_s1 = inlined_call_operand.vmem [shape: bf16[16,128], index: 1, kind: input, shape index: {}]   ;;  %s931_s2 = inlined_call_operand.vmem [shape: f32[1,128], index: 2, kind: input, shape index: {}]   ;;  %s932_s3 = inlined_call_operand.hbm [shape: bf16[512,128], index: 3, kind: output, shape index: {}]  }
   0x1   :  { %10 = vsyncpa [#allocation3 + $0x1], 0  ;;  %s798_s12 = smov 0   ;;  %s800_s13 = smov 0  }
   0x2   :  { %s802_s14 = smov 0   ;;  %s804_s15 = smov 0  }
   0x3 LB: > { %s819_s16 = sadd.s32 4294967295, %s773_s15   ;;  %s522_s17 = sadd.s32 4294967294, %s773_s15   ;;  %s773_s15 = sphi %s804_s15, %s938_s15   ;;  %s769_s14 = sphi %s802_s14, %s937_s14   ;;  %s765_s13 = sphi %s800_s13, %s936_s13   ;;  %s761_s12 = sphi %s798_s12, %s935_s12  }
   0x4   : > { %s823_s18 = sadd.s32 1, %s773_s15   ;;  %s91_s19 = sadd.s32 1, %s769_s14 }
   0x5   : > { %s88_s20 = ssub.s32 %s773_s15, %s823_s18  ;;  %p101_p0 = scmp.ne.s32.totalorder %s769_s14, %s765_s13 }
   0x6   : > { %p89_p1 = scmp.eq.s32.totalorder %s88_s20, 0  ;;  %p102_p2 = scmp.eq.s32.totalorder %s819_s16, 3 }
   0x7   : > { %p107_p3 = scmp.ne.s32.totalorder %s765_s13, %s761_s12  ;;  %p108_p4 = scmp.eq.s32.totalorder %s522_s17, 3 }
   0x8   : > { %s834_s21 = scalar_select %p89_p1, %s769_s14, %s91_s19  }
   0x9   : > { %p836_p5 = por %p102_p2, %p101_p0  ;;  %p840_p6 = por %p108_p4, %p107_p3 }
   0xa   : > { %p525_p7 = scmp.ge.s32.totalorder %s773_s15, 1  ;;  %p141_p8 = scmp.lt.s32.totalorder %s773_s15, 5 }
   0xc   : > { %p142_p9 = pnand %p525_p7, %p141_p8 }
   0xd   : > { %v702_v0 = vld [vmem:[%s930_s1] sm:$0xff] (!%p142_p9)   ;;  %s527_s26 = sshll.u32 (!%p142_p9), %s819_s16, 4  ;;  %vm244_vm0 = vcmask (!%p142_p9), 130048   ;;  %s162_s4 = sand.u32 (!%p142_p9), 1, %s765_s13  }
   0xe   : > { %145 = sbr.rel (%p142_p9) target bundleno = 269 (0x10d), region = 32  ;;  %p166_p10 = scmp.lt.s32.totalorder (!%p142_p9), %s527_s26, 63  ;;  %641 = vmatprep.subr.bf16.mxu0 (!%p142_p9), %v702_v0  ;;  %659 = vmatprep.subr.bf16.mxu1 (!%p142_p9), %v702_v0  ;;  %v529_v10 = vld [vmem:[%s931_s2] ss:$0 sm:$0xff] (!%p142_p9) }
   0xf   : > { %642 = vmatpush3.bf16.msra.mxu0 (!%p142_p9), %v702_v0  ;;  %660 = vmatpush3.bf16.msra.mxu1 (!%p142_p9), %v702_v0  ;;  %s526_s7 = sshll.u32 (!%p142_p9), %s162_s4, 6  ;;  %s584_s9 = sshll.u32 (!%p142_p9), %s819_s16, 10 }
  0x10   : > { %s867_s8 = scalar_lea.vmem (!%p142_p9), [#allocation2], %s526_s7  ;;  %s878_s16 = scalar_lea.hbm (!%p142_p9), %s932_s3, %s584_s9 }
  0x11   : > { %s460_s10 = sshll.u32 (!%p142_p9), %s867_s8, 4  ;;  %s888_s19 = scalar_lea.sflag (!%p142_p9), [#allocation3], %s162_s4  ;;  %s880_s10 = int_to_ptr.vmem [resolvable:$true] %s460_s10 }
  0x12   : > { %s711_s20 = scalar_lea.vmem (!%p142_p9), %s880_s10, 1024  ;;  %s775_s24 = smov (!%p142_p9), [#allocation2]  }
  0x13   : > { %p712_p11 = scmp.ne.s32.totalorder (!%p142_p9), %s880_s10, %s711_s20  ;;  %s715_s25 = sshll.u32 (!%p142_p9), %s775_s24, 4  ;;  %s716_s25 = int_to_ptr.vmem [resolvable:$false] %s715_s25 }
  0x14   : > { %p718_p0 = scmp.lt.s32.totalorder (!%p142_p9), %s880_s10, %s716_s25 }
  0x15   : > { %s940_s26 = smov (!%p166_p10, %s527_s26), 63  ;;  %p713_p12 = pnand %p712_p11, %p836_p5 }
  0x16   : > { %s528_s27 = sshll.u32 %s940_s26, 2  ;;  %s717_s26 = scalar_lea.vmem %s716_s25, 2048 }
  0x17   : > { %s169_s30 = scalar_lea.vmem %s929_s0, %s528_s27  ;;  %p714_p13 = pneg %p713_p12 }
  0x18   : > { %v703_v1 = vld [vmem:[%s169_s30] sm:$0xff]   ;;  %v705_v3 = vld [vmem:[%s169_s30 + $0x8] sm:$0xff]   ;;  %v707_v5 = vld [vmem:[%s169_s30 + $0x10] sm:$0xff]   ;;  %p719_p1 = scmp.lt.s32.totalorder %s717_s26, %s711_s20 }
  0x19   : > { %v704_v2 = vld [vmem:[%s169_s30 + $0x20] sm:$0xff]   ;;  %643 = vmatprep.mubr.msk.bf16.mxu0 %vm244_vm0, %v703_v1  ;;  %v706_v4 = vld [vmem:[%s169_s30 + $0x28] sm:$0xff]   ;;  %v708_v6 = vld [vmem:[%s169_s30 + $0x30] sm:$0xff]  }
  0x1a   : > { %651 = vmatprep.mubr.msk.bf16.mxu1 %vm244_vm0, %v704_v2  ;;  %644 = vmatmul.mubr.msk.bf16.vlgmr.msra.gmra.mrb[0].mxu0 %vm244_vm0, %v705_v3  ;;  %v709_v7 = vld [vmem:[%s169_s30 + $0x18] sm:$0xff]   ;;  %p720_p2 = por %p719_p1, %p718_p0 }
  0x1b   : > { %652 = vmatmul.mubr.msk.bf16.vlgmr.msra.gmra.mrb[0].mxu1 %vm244_vm0, %v706_v4  ;;  %647 = vmatprep.mubr.msk.bf16.mxu0 %vm244_vm0, %v707_v5  ;;  %v710_v8 = vld [vmem:[%s169_s30 + $0x38] sm:$0xff]  }
  0x1c   : > { %655 = vmatprep.mubr.msk.bf16.mxu1 %vm244_vm0, %v708_v6  ;;  %p721_p3 = pnand %p720_p2, %p714_p13 }
  0x22   : > { %648 = vmatmul.mubr.msk.bf16.gmra.mrb[4].mxu0 %vm244_vm0, %v709_v7 }
  0x23   : > { %656 = vmatmul.mubr.msk.bf16.gmra.mrb[4].mxu1 %vm244_vm0, %v710_v8 }
  0xed   : > { %v645_v9 = vpop.f32.mrb[0].mxu0 }
  0xee   : > { %v653_v11 = vpop.f32.mrb[0].mxu1  ;;  %v303_v12 = vpop.f32.mrb[1].mxu0  ;;  %v312_v15 = vadd.f32 %v645_v9, %v529_v10 }
  0xef   : > { %v335_v13 = vpop.f32.mrb[1].mxu1  ;;  %v646_v14 = vpop.f32.mrb[2].mxu0  ;;  %v344_v19 = vadd.f32 %v653_v11, %v529_v10  ;;  %v304_v20 = vadd.f32 %v529_v10, %v303_v12 }
  0xf0   : > { %v315_v16 = vadd.f32 %v646_v14, %v529_v10  ;;  %v654_v17 = vpop.f32.mrb[2].mxu1  ;;  %v306_v18 = vpop.f32.mrb[3].mxu0  ;;  %v336_v24 = vadd.f32 %v529_v10, %v335_v13 }
  0xf1   : > { %v347_v21 = vadd.f32 %v654_v17, %v529_v10  ;;  %v307_v22 = vadd.f32 %v529_v10, %v306_v18  ;;  %v338_v23 = vpop.f32.mrb[3].mxu1 }
  0xf2   : > { %v593_v25 = vpack.c.bf16 %v315_v16, %v312_v15  ;;  %v339_v26 = vadd.f32 %v529_v10, %v338_v23 }
  0xf3   : > { %v613_v27 = vpack.c.bf16 %v347_v21, %v344_v19  ;;  %v588_v28 = vpack.c.bf16 %v307_v22, %v304_v20 }
  0xf4   : > { %625 = vst [vmem:[%s867_s8 + $0x8] sm:$0xff] %v593_v25   ;;  %v608_v29 = vpack.c.bf16 %v339_v26, %v336_v24 }
  0xf5   : > { %629 = vst [vmem:[%s867_s8 + $0x28] sm:$0xff] %v613_v27   ;;  %589 = vst [vmem:[%s867_s8] sm:$0xff] %v588_v28   ;;  %v649_v30 = vpop.f32.mrb[4].mxu0 }
  0xf6   : > { %628 = vst [vmem:[%s867_s8 + $0x20] sm:$0xff] %v608_v29   ;;  %v657_v31 = vpop.f32.mrb[4].mxu1  ;;  %v319_v32 = vpop.f32.mrb[5].mxu0  ;;  %v328_v35 = vadd.f32 %v649_v30, %v529_v10 }
  0xf7   : > { %v351_v33 = vpop.f32.mrb[5].mxu1  ;;  %v650_v34 = vpop.f32.mrb[6].mxu0  ;;  %v360_v39 = vadd.f32 %v657_v31, %v529_v10  ;;  %v320_v40 = vadd.f32 %v529_v10, %v319_v32 }
  0xf8   : > { %v331_v36 = vadd.f32 %v650_v34, %v529_v10  ;;  %v658_v37 = vpop.f32.mrb[6].mxu1  ;;  %v322_v38 = vpop.f32.mrb[7].mxu0  ;;  %v352_v44 = vadd.f32 %v529_v10, %v351_v33 }
  0xf9   : > { %v363_v41 = vadd.f32 %v658_v37, %v529_v10  ;;  %v323_v42 = vadd.f32 %v529_v10, %v322_v38  ;;  %v354_v43 = vpop.f32.mrb[7].mxu1 }
  0xfa   : > { %v603_v45 = vpack.c.bf16 %v331_v36, %v328_v35  ;;  %v355_v46 = vadd.f32 %v529_v10, %v354_v43 }
  0xfb   : > { %v623_v47 = vpack.c.bf16 %v363_v41, %v360_v39  ;;  %v598_v48 = vpack.c.bf16 %v323_v42, %v320_v40 }
  0xfc   : > { %627 = vst [vmem:[%s867_s8 + $0x18] sm:$0xff] %v603_v45   ;;  %v618_v49 = vpack.c.bf16 %v355_v46, %v352_v44 }
  0xfd   : > { %631 = vst [vmem:[%s867_s8 + $0x38] sm:$0xff] %v623_v47   ;;  %626 = vst [vmem:[%s867_s8 + $0x10] sm:$0xff] %v598_v48  }
  0xfe   : > { %630 = vst [vmem:[%s867_s8 + $0x30] sm:$0xff] %v618_v49  }
  0xff   : > { %724 = shalt.err (!%p721_p3)
}
 0x100   : > { %s725_s27 = scalar_lea.hbm %s878_s16, 1024  ;;  %s729_s30 = scalar_lea.hbm %s932_s3, 4096 }
 0x101   : > { %p726_p4 = scmp.ne.s32.totalorder %s878_s16, %s725_s27  ;;  %p730_p9 = scmp.lt.u32.totalorder %s878_s16, %s932_s3 }
 0x102   : > { %p731_p10 = scmp.lt.u32.totalorder %s729_s30, %s725_s27  ;;  %p733_p12 = scmp.lt.u32.totalorder %s725_s27, %s878_s16 }
 0x103   : > { %p727_p7 = pnand %p726_p4, %p836_p5 }
 0x104   : > { %p732_p11 = por %p731_p10, %p730_p9 }
 0x105   : > { %p728_p8 = pneg %p727_p7 }
 0x106   : > { %p734_p13 = por %p733_p12, %p732_p11 }
 0x108   : > { %p735_p0 = pnand %p734_p13, %p728_p8 }
 0x10a   : > { %738 = shalt.err (!%p735_p0)
}
 0x10b   : > { %s776_s6 = smov 64   ;;  %s777_s7 = smov 4  }
 0x10c   : > { %661 = dma.vmem_to_hbm [thread:$0]  (%p836_p5), %s880_s10, 1024, %s878_s16, %s888_s19, %s776_s6, %s776_s6, %s777_s7  }
 0x10d PF: > { %p667_p1 = scmp.ge.s32.totalorder %s773_s15, 2  ;;  %s475_s8 = sand.u32 1, %s761_s12  }
 0x10e   : > { %s476_s9 = scalar_lea.sflag [#allocation3], %s475_s8 }
 0x10f   : > { %p664_p2 = pnand %p667_p1, %p840_p6 }
 0x111   : > { %756 = dma.done.wait (!%p664_p2), %s476_s9, 1024  }
 0x112   : > { %758 = vsyncadd (!%p664_p2), %s476_s9, 4294966272  ;;  %p13_p3 = scmp.ge.s32.totalorder %s823_s18, 6   ;;  %s935_s12 = smov %s765_s13 }
 0x113   : > { %s936_s13 = smov %s769_s14  ;;  %s937_s14 = smov %s834_s21 }
 0x114   : > { %s938_s15 = smov %s823_s18  ;;  %15 = sbr.rel (!%p13_p3) target bundleno = 3 (0x3), region = 67 }
 0x11b   :  { %481 = vsyncpa [#allocation3], 1 }
 0x11c   :  { %483 = vsyncpa [#allocation3 + $0x1], 1 }

</bundles_post_ra>
